<compile_context>
chip_gen: v6e
topology: v6e:2x2x1
jax: 0.10.0
libtpu: 0.0.40
codegen_flags: <defaults>
</compile_context>

<pallas_src>
import math

import jax
import jax.numpy as jnp
from jax import lax
from jax.experimental import pallas as pl
from jax.experimental.pallas import tpu as pltpu


def _round_up(x, m):
    return ((x + m - 1) // m) * m


# ----------------------------- kernels ------------------------------------ #

_CONTRACT_LAST = (((1,), (1,)), ((), ()))   # (tq,H) x (tk,H) -> (tq,tk)
_Q_TIMES_W = (((1,), (0,)), ((), ()))       # (tq,H) x (H,H)  -> (tq,H)


def _dot_kernel(q_ref, k_ref, o_ref):
    # q_ref: (tq, H) bf16, k_ref: (tk, H) bf16, o_ref: (tq, tk) f32
    o_ref[...] = lax.dot_general(
        q_ref[...], k_ref[...],
        dimension_numbers=_CONTRACT_LAST,
        preferred_element_type=jnp.float32,
    ).astype(o_ref.dtype)


def _bilinear_kernel(q_ref, k_ref, w_ref, o_ref, qw_ref):
    # score = (q @ W) @ k^T ; qW cached across Lk tiles.
    @pl.when(pl.program_id(2) == 0)
    def _():
        qw_ref[...] = lax.dot_general(
            q_ref[...], w_ref[...],
            dimension_numbers=_Q_TIMES_W,
            preferred_element_type=jnp.float32,
        ).astype(qw_ref.dtype)

    o_ref[...] = lax.dot_general(
        qw_ref[...], k_ref[...],
        dimension_numbers=_CONTRACT_LAST,
        preferred_element_type=jnp.float32,
    ).astype(o_ref.dtype)


def _general_kernel(q_ref, k_ref, w_ref, b_ref, o_ref, qw_ref, qb_ref):
    # Original: q @ (k @ W^T + b)^T.  Rewritten: (q @ W) @ k^T + (q . b),
    # where W is the nn.Linear weight (out, in) and b broadcasts over Lk.
    @pl.when(pl.program_id(2) == 0)
    def _():
        q = q_ref[...]
        qw_ref[...] = lax.dot_general(
            q, w_ref[...],
            dimension_numbers=_Q_TIMES_W,
            preferred_element_type=jnp.float32,
        ).astype(qw_ref.dtype)
        qb_ref[...] = jnp.sum(
            q.astype(jnp.float32) * b_ref[...].astype(jnp.float32),
            axis=-1, keepdims=True,
        )

    scores = lax.dot_general(
        qw_ref[...], k_ref[...],
        dimension_numbers=_CONTRACT_LAST,
        preferred_element_type=jnp.float32,
    )
    o_ref[...] = (scores + qb_ref[...]).astype(o_ref.dtype)


# ----------------------------- wrapper ------------------------------------ #

class AttentionPallas:
    """Pallas port of the PyTorch Attention module (deterministic init)."""

    def __init__(self, hidden, alignment_network="dot", key=None):
        self.style = alignment_network.lower()
        self.hidden = hidden
        key = jax.random.PRNGKey(42) if key is None else key

        if self.style == "general":
            # nn.Linear default init: U(-1/sqrt(fan_in), 1/sqrt(fan_in))
            kw, kb = jax.random.split(key)
            bound = 1.0 / math.sqrt(hidden)
            self.w = jax.random.uniform(kw, (hidden, hidden), jnp.float32,
                                        -bound, bound)
            self.b = jax.random.uniform(kb, (1, hidden), jnp.float32,
                                        -bound, bound)
        elif self.style == "bilinear":
            stdv = 1.0 / math.sqrt(hidden)
            self.w = jax.random.uniform(key, (hidden, hidden), jnp.float32,
                                        -stdv, stdv)

    def __call__(self, query, key):
        B, Lq, H = query.shape
        _, Lk, _ = key.shape
        assert H == self.hidden

        # bf16 MXU operands (f32 accumulation in-kernel). Precision tradeoff.
        q = query.astype(jnp.bfloat16)
        k = key.astype(jnp.bfloat16)

        # Tile sizes: sublane-aligned q tiles, lane-dense (x128) k/output tiles,
        # capped at 256 to stay well under the v7x 64 MiB VMEM budget even with
        # double-buffering and large H.
        tq = min(_round_up(Lq, 8), 256)
        tk = min(_round_up(Lk, 128), 256)
        Lq_pad = _round_up(Lq, tq)
        Lk_pad = _round_up(Lk, tk)
        if Lq_pad != Lq:
            q = jnp.pad(q, ((0, 0), (0, Lq_pad - Lq), (0, 0)))
        if Lk_pad != Lk:
            k = jnp.pad(k, ((0, 0), (0, Lk_pad - Lk), (0, 0)))

        grid = (B, Lq_pad // tq, Lk_pad // tk)

        out_shape = jax.ShapeDtypeStruct((B, Lq_pad, Lk_pad), jnp.float32)
        q_spec = pl.BlockSpec((None, tq, H), lambda b, i, j: (b, i, 0))
        k_spec = pl.BlockSpec((None, tk, H), lambda b, i, j: (b, j, 0))
        o_spec = pl.BlockSpec((None, tq, tk), lambda b, i, j: (b, i, j))
        w_spec = pl.BlockSpec((H, H), lambda b, i, j: (0, 0))
        params = pltpu.CompilerParams(
            dimension_semantics=("parallel", "parallel", "arbitrary"),
            vmem_limit_bytes=48 * 1024 * 1024,
        )

        if self.style == "dot":
            out = pl.pallas_call(
                _dot_kernel,
                out_shape=out_shape,
                grid=grid,
                in_specs=[q_spec, k_spec],
                out_specs=o_spec,
                compiler_params=params,
            )(q, k)

        elif self.style == "general":
            b_spec = pl.BlockSpec((1, H), lambda b, i, j: (0, 0))
            out = pl.pallas_call(
                _general_kernel,
                out_shape=out_shape,
                grid=grid,
                in_specs=[q_spec, k_spec, w_spec, b_spec],
                out_specs=o_spec,
                scratch_shapes=[pltpu.VMEM((tq, H), jnp.bfloat16),
                                pltpu.VMEM((tq, 1), jnp.float32)],
                compiler_params=params,
            )(q, k, self.w.astype(jnp.bfloat16), self.b.astype(jnp.bfloat16))

        elif self.style == "bilinear":
            out = pl.pallas_call(
                _bilinear_kernel,
                out_shape=out_shape,
                grid=grid,
                in_specs=[q_spec, k_spec, w_spec],
                out_specs=o_spec,
                scratch_shapes=[pltpu.VMEM((tq, H), jnp.bfloat16)],
                compiler_params=params,
            )(q, k, self.w.astype(jnp.bfloat16))

        else:
            raise NotImplementedError(f"style {self.style!r} not supported")

        if Lq_pad != Lq or Lk_pad != Lk:
            out = out[:, :Lq, :Lk]
        return out


# --------------------------- reference (plain JAX) ------------------------- #

def _reference(style, query, key, w=None, b=None):
    """Original (un-rewritten) PyTorch formula in f32 ('highest' precision)."""
    if style == "dot":
        return jnp.einsum("bqh,bkh->bqk", query, key, precision="highest")
    if style == "general":
        kt = jnp.einsum("bkh,oh->bko", key, w, precision="highest") + b
        return jnp.einsum("bqh,bkh->bqk", query, kt, precision="highest")
    if style == "bilinear":
        return jnp.einsum("bqh,hm,bkm->bqk", query, w, key,
                          precision="highest")
    raise NotImplementedError(style)


# --------------------------------- main ------------------------------------ #

if __name__ == "__main__":
    B, Lq, Lk, H = 2, 8, 8, 32
    root = jax.random.PRNGKey(0)
    kq, kk, kp = jax.random.split(root, 3)
    query = jax.random.normal(kq, (B, Lq, H), jnp.float32)
    key = jax.random.normal(kk, (B, Lk, H), jnp.float32)

    ok = True
    for style in ("dot", "general", "bilinear"):
        attn = AttentionPallas(H, alignment_network=style, key=kp)
        out = attn(query, key)
        jax.block_until_ready(out)

        # Reference uses the same bf16-rounded operands the kernel consumes
        # (the kernel's bf16 MXU path is a deliberate precision tradeoff).
        q_r = query.astype(jnp.bfloat16).astype(jnp.float32)
        k_r = key.astype(jnp.bfloat16).astype(jnp.float32)
        w_r = getattr(attn, "w", None)
        b_r = getattr(attn, "b", None)
        if w_r is not None:
            w_r = w_r.astype(jnp.bfloat16).astype(jnp.float32)
        if b_r is not None:
            b_r = b_r.astype(jnp.bfloat16).astype(jnp.float32)

        ref = _reference(style, q_r, k_r, w_r, b_r)
        if not jnp.allclose(out, ref, atol=5e-2, rtol=5e-2):
            ok = False
            print(f"MISMATCH in style={style}: "
                  f"max err {float(jnp.max(jnp.abs(out - ref)))}")

    if ok:
        print("KERNEL_OK")
</pallas_src>

<mosaic_0001>
module attributes {stable_mosaic.version = 11 : i64} {
  func.func @_dot_kernel(%arg0: i32, %arg1: i32, %arg2: i32, %arg3: memref<1x8x32xbf16, #tpu.memory_space<vmem>>, %arg4: memref<1x128x32xbf16, #tpu.memory_space<vmem>>, %arg5: memref<1x8x128xf32, #tpu.memory_space<vmem>>) attributes {dimension_semantics = [#tpu.dimension_semantics<parallel>, #tpu.dimension_semantics<parallel>, #tpu.dimension_semantics<arbitrary>], iteration_bounds = array<i64: 2, 1, 1>, scalar_prefetch = 0 : i64, scratch_operands = 0 : i64, tpu.core_type = #tpu.core_type<tc>, window_params = [{transform_indices = @transform_0, window_bounds = array<i64: 1, 8, 32>}, {transform_indices = @transform_1, window_bounds = array<i64: 1, 128, 32>}, {transform_indices = @transform_2, window_bounds = array<i64: 1, 8, 128>}]} {
    %c0 = arith.constant 0 : index
    %c0_0 = arith.constant 0 : index
    %c0_1 = arith.constant 0 : index
    %0 = vector.load %arg3[%c0, %c0_0, %c0_1] : memref<1x8x32xbf16, #tpu.memory_space<vmem>>, vector<1x8x32xbf16>
    %1 = vector.shape_cast %0 : vector<1x8x32xbf16> to vector<8x32xbf16>
    %c0_2 = arith.constant 0 : index
    %c0_3 = arith.constant 0 : index
    %c0_4 = arith.constant 0 : index
    %2 = vector.load %arg4[%c0_2, %c0_3, %c0_4] : memref<1x128x32xbf16, #tpu.memory_space<vmem>>, vector<1x128x32xbf16>
    %3 = vector.shape_cast %2 : vector<1x128x32xbf16> to vector<128x32xbf16>
    %cst = arith.constant dense<0.000000e+00> : vector<8x128xf32>
    %4 = tpu.matmul %1, %3, %cst {dimension_numbers = #tpu.dot_dimension_numbers<[1], [1], [0], [0], [0, 0, 1, 0], [], []>} : vector<8x32xbf16>, vector<128x32xbf16>, vector<8x128xf32> -> vector<8x128xf32>
    %c0_5 = arith.constant 0 : index
    %c0_6 = arith.constant 0 : index
    %c0_7 = arith.constant 0 : index
    %5 = vector.load %arg5[%c0_5, %c0_6, %c0_7] : memref<1x8x128xf32, #tpu.memory_space<vmem>>, vector<1x8x128xf32>
    %6 = vector.shape_cast %5 : vector<1x8x128xf32> to vector<8x128xf32>
    %7 = vector.shape_cast %4 : vector<8x128xf32> to vector<1x8x128xf32>
    tpu.vector_store %arg5[%c0_5, %c0_6, %c0_7], %7 {strides = array<i32>} : memref<1x8x128xf32, #tpu.memory_space<vmem>>, vector<1x8x128xf32>,
    return
  }
  func.func @transform_0(%arg0: i32, %arg1: i32, %arg2: i32) -> (i32, i32, i32) {
    %c0_i32 = arith.constant 0 : i32
    %c0_i32_0 = arith.constant 0 : i32
    return %arg0, %arg1, %c0_i32 : i32, i32, i32
  }
  func.func @transform_1(%arg0: i32, %arg1: i32, %arg2: i32) -> (i32, i32, i32) {
    %c0_i32 = arith.constant 0 : i32
    %c0_i32_0 = arith.constant 0 : i32
    return %arg0, %arg2, %c0_i32 : i32, i32, i32
  }
  func.func @transform_2(%arg0: i32, %arg1: i32, %arg2: i32) -> (i32, i32, i32) {
    %c0_i32 = arith.constant 0 : i32
    return %arg0, %arg1, %arg2 : i32, i32, i32
  }
}

</mosaic_0001>

<bundles_post_ra>
// kernel: tpu_custom_call.1
= control target key start
LH: loop header
LB: loop body
LE: loop exit
PB: predicated region body
PF: predicated region fallthrough
CT: control target
= control target key end

     0   :  { %7 = vsyncpa [#allocation3], 0  ;;  %s785_s0 = inlined_call_operand.vmem [shape: bf16[2,8,32], index: 0, kind: input, shape index: {}]   ;;  %s786_s1 = inlined_call_operand.vmem [shape: bf16[2,128,32], index: 1, kind: input, shape index: {}]   ;;  %s787_s2 = inlined_call_operand.hbm [shape: f32[2,8,128], index: 2, kind: output, shape index: {}]  }
   0x1   :  { %9 = vsyncpa [#allocation3 + $0x1], 0  ;;  %s658_s9 = smov 0   ;;  %s660_s10 = smov 0  }
   0x2   :  { %s662_s11 = smov 0   ;;  %s664_s12 = smov 0  }
   0x3   :  { %s666_s13 = smov 0   ;;  %s668_s14 = smov 0  }
   0x4 LB: > { %s445_s15 = sadd.s32 4294967295, %s638_s14   ;;  %s446_s16 = sadd.s32 4294967294, %s638_s14   ;;  %s638_s14 = sphi %s668_s14, %s15_s14   ;;  %s634_s13 = sphi %s666_s13, %s794_s13   ;;  %s630_s12 = sphi %s664_s12, %s793_s12   ;;  %s626_s11 = sphi %s662_s11, %s792_s11   ;;  %s622_s10 = sphi %s660_s10, %s791_s10   ;;  %s618_s9 = sphi %s658_s9, %s790_s9  }
   0x5   : > { %s34_s17 = sadd.s32 1, %s634_s13  ;;  %s101_s18 = sadd.s32 1, %s626_s11 }
   0x6   : > { %p36_p0 = scmp.ge.s32.totalorder %s34_s17, 2  ;;  %p111_p1 = scmp.ne.s32.totalorder %s626_s11, %s622_s10 }
   0x7   : > { %p112_p2 = scmp.eq.s32.totalorder %s445_s15, 1  ;;  %p117_p3 = scmp.ne.s32.totalorder %s622_s10, %s618_s9 }
   0x8   : > { %s796_s17 = smov (%p36_p0, %s34_s17), 0  ;;  %p118_p5 = scmp.eq.s32.totalorder %s446_s16, 1 }
   0x9   : > { %p698_p4 = por %p112_p2, %p111_p1  ;;  %s94_s20 = ssub.s32 %s634_s13, %s796_s17 }
   0xa   : > { %p449_p6 = scmp.ge.s32.totalorder %s638_s14, 1  ;;  %p99_p7 = scmp.eq.s32.totalorder %s94_s20, 0 }
   0xb   : > { %p705_p8 = por %p118_p5, %p117_p3  ;;  %p159_p9 = scmp.lt.s32.totalorder %s638_s14, 3 }
   0xc   : > { %s711_s22 = scalar_select %p99_p7, %s626_s11, %s101_s18  }
   0xd   : > { %p160_p10 = pnand %p449_p6, %p159_p9 }
   0xe   : > { %p192_p11 = scmp.lt.s32.totalorder (!%p160_p10), %s630_s12, 1  ;;  %s189_s4 = sand.u32 (!%p160_p10), 1, %s622_s10  }
   0xf   : > { %163 = sbr.rel (%p160_p10) target bundleno = 298 (0x12a), region = 28  ;;  %s450_s5 = sshll.u32 (!%p160_p10), %s189_s4, 3 }
  0x10   : > { %s191_s6 = scalar_lea.vmem (!%p160_p10), [#allocation2], %s450_s5  ;;  %s464_s8 = sshll.u32 (!%p160_p10), %s630_s12, 7 }
  0x11   : > { %s352_s7 = sshll.u32 (!%p160_p10), %s191_s6, 4  ;;  %s741_s18 = scalar_lea.hbm (!%p160_p10), %s787_s2, %s464_s8  ;;  %s736_s7 = int_to_ptr.vmem [resolvable:$true] %s352_s7 }
  0x12   : > { %s337_s20 = scalar_lea.sflag (!%p160_p10), [#allocation3], %s189_s4 }
  0x14   : > { %v640_v0 = vmov 0.0   ;;  %vm641_vm0 = vmmov 0   ;;  %s715_s23 = scalar_select %p192_p11, %s630_s12, 1  ;;  %vm267_vm1 = vcmask 261120  }
  0x15   : > { %477 = vmatprep.subr.bf16.mxu0 %v640_v0  ;;  %493 = vmatprep.mubr.msk.bf16.mxu0 %vm641_vm0, %v640_v0  ;;  %s642_s12 = smov [#allocation2]  }
  0x16   : > { %s467_s24 = sshll.u32 %s715_s23, 6  ;;  %s451_s28 = sshll.u32 %s715_s23, 2 }
  0x17   : > { %s207_s27 = scalar_lea.vmem %s786_s1, %s467_s24  ;;  %s198_s3 = scalar_lea.vmem %s785_s0, %s451_s28 }
  0x18   : > { %v554_v1 = vld [vmem:[%s207_s27 + $0x38] sm:$0xff]   ;;  %v555_v3 = vld [vmem:[%s207_s27 + $0x30] sm:$0xff]   ;;  %v556_v5 = vld [vmem:[%s207_s27 + $0x28] sm:$0xff]   ;;  %s562_s23 = scalar_lea.vmem %s736_s7, 128  ;;  %s566_s24 = sshll.u32 %s642_s12, 4  ;;  %s567_s24 = int_to_ptr.vmem [resolvable:$false] %s566_s24 }
  0x19   : > { %v293_v2 = vsel %vm267_vm1, %v554_v1, 0  ;;  %v290_v4 = vsel %vm267_vm1, %v555_v3, 0  ;;  %v287_v6 = vsel %vm267_vm1, %v556_v5, 0  ;;  %v557_v7 = vld [vmem:[%s207_s27 + $0x20] sm:$0xff]   ;;  %v558_v9 = vld [vmem:[%s207_s27 + $0x18] sm:$0xff]   ;;  %v559_v11 = vld [vmem:[%s207_s27 + $0x10] sm:$0xff]   ;;  %p563_p12 = scmp.ne.s32.totalorder %s736_s7, %s562_s23  ;;  %p569_p1 = scmp.lt.s32.totalorder %s736_s7, %s567_s24 }
  0x1a   : > { %478 = vmatpush3.bf16.xpose.msra.mxu0 %v293_v2  ;;  %v284_v8 = vsel %vm267_vm1, %v557_v7, 0  ;;  %v281_v10 = vsel %vm267_vm1, %v558_v9, 0  ;;  %v278_v12 = vsel %vm267_vm1, %v559_v11, 0  ;;  %v560_v13 = vld [vmem:[%s207_s27 + $0x8] sm:$0xff]   ;;  %v561_v15 = vld [vmem:[%s207_s27] sm:$0xff]   ;;  %s568_s25 = scalar_lea.vmem %s567_s24, 256 }
  0x1b   : > { %479 = vmatprep.subr.bf16.mxu0 %v640_v0  ;;  %v275_v14 = vsel %vm267_vm1, %v560_v13, 0  ;;  %v272_v16 = vsel %vm267_vm1, %v561_v15, 0  ;;  %v210_v17 = vld [vmem:[%s198_s3] sm:$0xf]  ;;  %p564_p13 = pnand %p563_p12, %p698_p4  ;;  %p570_p2 = scmp.lt.s32.totalorder %s568_s25, %s562_s23 }
  0x1d   : > { %p565_p0 = pneg %p564_p13  ;;  %p571_p3 = por %p570_p2, %p569_p1 }
  0x1f   : > { %p572_p5 = pnand %p571_p3, %p565_p0 }
  0x22   : > { %480 = vmatpush3.bf16.xpose.msra.mxu0 %v290_v4 }
  0x23   : > { %481 = vmatprep.subr.bf16.mxu0 %v640_v0 }
  0x2a   : > { %482 = vmatpush3.bf16.xpose.msra.mxu0 %v287_v6 }
  0x2b   : > { %483 = vmatprep.subr.bf16.mxu0 %v640_v0 }
  0x32   : > { %484 = vmatpush3.bf16.xpose.msra.mxu0 %v284_v8 }
  0x33   : > { %485 = vmatprep.subr.bf16.mxu0 %v640_v0 }
  0x3a   : > { %486 = vmatpush3.bf16.xpose.msra.mxu0 %v281_v10 }
  0x3b   : > { %487 = vmatprep.subr.bf16.mxu0 %v640_v0 }
  0x42   : > { %488 = vmatpush3.bf16.xpose.msra.mxu0 %v278_v12 }
  0x43   : > { %489 = vmatprep.subr.bf16.mxu0 %v640_v0 }
  0x4a   : > { %490 = vmatpush3.bf16.xpose.msra.mxu0 %v275_v14 }
  0x4b   : > { %491 = vmatprep.subr.bf16.mxu0 %v640_v0 }
  0x52   : > { %492 = vmatpush3.bf16.xpose.msra.mxu0 %v272_v16 }
  0x59   : > { %494 = vmatmul.mubr.msk.bf16.vlgmr.msra.gmra.mxu0 %vm267_vm1, %v210_v17 }
 0x119   : > { %v329_v18 = vpop.f32.mrf.mxu0 }
 0x11a   : > { %335 = vst [vmem:[%s191_s6] sm:$0xff] %v329_v18 }
 0x11b   : > { %v495_v19 = vpop.f32.mrf.mxu0 }
 0x11c   : > { %575 = shalt.err (!%p572_p5)
}
 0x11d   : > { %s576_s26 = scalar_lea.hbm %s741_s18, 128  ;;  %s580_s29 = scalar_lea.hbm %s787_s2, 256 }
 0x11e   : > { %p577_p6 = scmp.ne.s32.totalorder %s741_s18, %s576_s26  ;;  %p581_p10 = scmp.lt.s32.totalorder %s741_s18, %s787_s2 }
 0x11f   : > { %p582_p11 = scmp.lt.s32.totalorder %s580_s29, %s576_s26 }
 0x120   : > { %p578_p7 = pnand %p577_p6, %p698_p4 }
 0x121   : > { %p583_p12 = por %p582_p11, %p581_p10 }
 0x122   : > { %p579_p9 = pneg %p578_p7 }
 0x124   : > { %p584_p13 = pnand %p583_p12, %p579_p9 }
 0x126   : > { %587 = shalt.err (!%p584_p13)
}
 0x127   : > { %497 = dma.vmem_to_hbm [thread:$0]  (%p698_p4), %s736_s7, 128, %s741_s18, %s337_s20   ;;  %v332_v20 = vpop.f32.mrf.mxu0 }
 0x129   : > { %v496_v21 = vpop.f32.mrf.mxu0 }
 0x12a PF: > { %p503_p0 = scmp.ge.s32.totalorder %s638_s14, 2  ;;  %s364_s4 = sand.u32 1, %s618_s9  }
 0x12b   : > { %s365_s5 = scalar_lea.sflag [#allocation3], %s364_s4 }
 0x12c   : > { %p500_p1 = pnand %p503_p0, %p705_p8 }
 0x12e   : > { %p501_p2 = pneg %p500_p1 }
 0x130   : > { %613 = dma.done.wait (%p501_p2), %s365_s5, 128  }
 0x131   : > { %615 = vsyncadd (%p501_p2), %s365_s5, 4294967168  ;;  %s15_s14 = sadd.s32 1, %s638_s14   ;;  %s790_s9 = smov %s622_s10 }
 0x132   : > { %p12_p3 = scmp.ge.s32.totalorder %s15_s14, 4   ;;  %s791_s10 = smov %s626_s11 }
 0x133   : > { %s792_s11 = smov %s711_s22  ;;  %s793_s12 = smov %s634_s13 }
 0x134   : > { %s794_s13 = smov %s796_s17  ;;  %14 = sbr.rel (!%p12_p3) target bundleno = 4 (0x4), region = 66 }
 0x139   :  { %370 = vsyncpa [#allocation3], 1 }
 0x13a   :  { %372 = vsyncpa [#allocation3 + $0x1], 1 }

</bundles_post_ra>
